<compile_context>
chip_gen: v7x
topology: tpu7x:2x2x1
jax: 0.10.0
libtpu: 0.0.40
codegen_flags: <defaults>
</compile_context>

<pallas_src>
import functools

import jax
import jax.numpy as jnp
from jax.experimental import pallas as pl
from jax.experimental.pallas import tpu as pltpu

_LANES = 128
_SUBLANES = 8
_MAX_BLOCK_ROWS = 1024     # 1024 * 128 * 4B = 512 KiB per f32 block


def _cdiv(a, b):
    return -(-a // b)


def _detect_num_tensorcores():
    """2 only on chips exposing 2 TensorCores behind one device (v7x)."""
    try:
        kind = jax.devices()[0].device_kind.lower()
    except Exception:
        return 1
    return 2 if "v7" in kind else 1


def _row_alignment(dtype):
    """Rows (of 128 lanes) per native sublane tile for this dtype."""
    itemsize = jnp.dtype(dtype).itemsize
    pack = max(1, 4 // itemsize)          # f32 -> 1, bf16 -> 2, int8 -> 4
    return _SUBLANES * pack


# ---------------------------------------------------------------------------
# Elementwise loss terms (all choices are static Python-level decisions)
# ---------------------------------------------------------------------------
def _softplus_tail(x, trans_dtype):
    # log(1 + exp(-|x|)) — the transcendental half of a stable softplus.
    # trans_dtype=bfloat16 halves EUP pressure on v6e/v7x; result is cast
    # back to f32 before accumulation.
    z = (-jnp.abs(x)).astype(trans_dtype)
    return jnp.log(1.0 + jnp.exp(z)).astype(jnp.float32)


def _make_elem_fn(gan_type, target_is_real, is_disc, real_label_val,
                  fake_label_val, trans_dtype):
    """Return f such that GANLoss.forward == scale * mean(f(input))."""
    if gan_type == "vanilla":
        t = float(real_label_val if target_is_real else fake_label_val)

        # BCEWithLogitsLoss with a constant target t (stable formulation).
        def f(x):
            return jnp.maximum(x, 0.0) - x * t + _softplus_tail(x, trans_dtype)
    elif gan_type == "lsgan":
        t = float(real_label_val if target_is_real else fake_label_val)

        def f(x):
            d = x - t
            return d * d
    elif gan_type == "wgan":
        sign = -1.0 if target_is_real else 1.0

        def f(x):
            return sign * x
    elif gan_type == "wgan_softplus":
        sign = -1.0 if target_is_real else 1.0

        def f(x):
            z = sign * x
            return jnp.maximum(z, 0.0) + _softplus_tail(z, trans_dtype)
    elif gan_type == "hinge":
        if is_disc:
            sign = -1.0 if target_is_real else 1.0

            def f(x):
                return jnp.maximum(1.0 + sign * x, 0.0)
        else:

            def f(x):
                return -x
    else:
        raise NotImplementedError(f"GAN type {gan_type} is not implemented.")
    return f


# ---------------------------------------------------------------------------
# Kernel: per-core partial sum of f(x) over lane-dense (block_rows, 128) tiles
# ---------------------------------------------------------------------------
def _gan_reduce_kernel(x_ref, acc_ref, *, elem_fn, block_rows,
                       blocks_per_core, num_blocks, rows_valid,
                       has_partial_last, has_dup):
    c = pl.program_id(0)   # core split (CORE_PARALLEL on 2-TC chips)
    i = pl.program_id(1)   # reduction step within this core (arbitrary)
    blk = c * blocks_per_core + i

    @pl.when(i == 0)
    def _init():
        acc_ref[...] = jnp.zeros_like(acc_ref)

    def _accumulate(mask_tail):
        x = x_ref[...].astype(jnp.float32)
        val = elem_fn(x)
        if mask_tail:
            # Only the over-read region of the partial last block can hold
            # stale/garbage VMEM.  A single true select on the transform
            # output keeps NaN/Inf garbage from contaminating the sum.
            row = (jax.lax.broadcasted_iota(jnp.int32, val.shape, 0)
                   + blk * block_rows)
            val = jnp.where(row < rows_valid, val, 0.0)
        # Fold (block_rows, 128) -> (8, 128) with pure vreg adds; the
        # lane-dense accumulator block stays resident across the inner axis.
        acc_ref[...] += val.reshape(-1, _SUBLANES, _LANES).sum(axis=0)[None]

    if has_partial_last:
        # Mask-free fast path for every block except the one that over-reads.
        @pl.when(blk == num_blocks - 1)
        def _tail_block():
            _accumulate(mask_tail=True)

        @pl.when(blk < num_blocks - 1)
        def _full_blocks():
            _accumulate(mask_tail=False)
    elif has_dup:
        # Duplicated (over-covered) blocks from the core split: skip entirely.
        @pl.when(blk < num_blocks)
        def _real_blocks():
            _accumulate(mask_tail=False)
    else:
        _accumulate(mask_tail=False)


def _pallas_sum(elem_fn, x, *, transcendentals_per_elem=0, num_cores=None):
    """Returns (sum(elem_fn(x)) over all elements as f32, element count)."""
    flat = x.reshape(-1)
    n = flat.shape[0]
    if num_cores is None:
        num_cores = _detect_num_tensorcores()

    # Kernel consumes the largest tile-aligned prefix (free reshape of the
    # original buffer, no pad / no O(n) copy); the tiny tail goes through
    # plain JAX in the wrapper.
    align_rows = _row_alignment(flat.dtype)
    align_elems = align_rows * _LANES
    n_main = (n // align_elems) * align_elems

    tail_sum = jnp.float32(0.0)
    if n_main < n:
        tail_sum = jnp.sum(elem_fn(flat[n_main:].astype(jnp.float32)))
    if n_main == 0:
        return tail_sum, n

    main = flat if n_main == n else flat[:n_main]
    rows = n_main // _LANES                  # multiple of align_rows
    x2d = main.reshape(rows, _LANES)

    block_rows = min(_MAX_BLOCK_ROWS, rows)  # stays a multiple of align_rows
    num_blocks = _cdiv(rows, block_rows)
    blocks_per_core = _cdiv(num_blocks, num_cores)

    # Invariant: the only garbage the kernel can see comes from the DMA
    # over-read of the partial last block (rows % block_rows != 0); the
    # kernel masks exactly that block and nothing else.
    has_partial_last = (rows % block_rows) != 0
    has_dup = (num_cores * blocks_per_core) != num_blocks

    kernel = functools.partial(
        _gan_reduce_kernel, elem_fn=elem_fn, block_rows=block_rows,
        blocks_per_core=blocks_per_core, num_blocks=num_blocks,
        rows_valid=rows, has_partial_last=has_partial_last, has_dup=has_dup)

    if has_dup:
        def in_map(c, i):
            # Clamp duplicated blocks so they never DMA out of bounds; their
            # contribution is skipped in-kernel via pl.when.
            return (jnp.minimum(c * blocks_per_core + i, num_blocks - 1), 0)
    else:
        def in_map(c, i):
            return (c * blocks_per_core + i, 0)

    if num_cores > 1:
        semantics = (pltpu.CORE_PARALLEL, pltpu.ARBITRARY)
    else:
        semantics = (pltpu.ARBITRARY, pltpu.ARBITRARY)

    cost = pl.CostEstimate(
        flops=6 * n_main,
        transcendentals=transcendentals_per_elem * n_main,
        bytes_accessed=n_main * jnp.dtype(x2d.dtype).itemsize
        + num_cores * _SUBLANES * _LANES * 4)

    partials = pl.pallas_call(
        kernel,
        out_shape=jax.ShapeDtypeStruct((num_cores, _SUBLANES, _LANES),
                                       jnp.float32),
        grid_spec=pltpu.PrefetchScalarGridSpec(
            num_scalar_prefetch=0,
            grid=(num_cores, blocks_per_core),
            in_specs=[pl.BlockSpec((block_rows, _LANES), in_map)],
            out_specs=pl.BlockSpec((1, _SUBLANES, _LANES),
                                   lambda c, i: (c, 0, 0)),
        ),
        compiler_params=pltpu.CompilerParams(dimension_semantics=semantics),
        cost_estimate=cost,
    )(x2d)
    return jnp.sum(partials) + tail_sum, n


# ---------------------------------------------------------------------------
# Module-equivalent wrapper
# ---------------------------------------------------------------------------
class GANLossPallas:
    """Pallas TPU port of GANLoss (forward pass, scalar loss)."""

    def __init__(self, gan_type, real_label_val=1.0, fake_label_val=0.0,
                 loss_weight=1.0, bf16_transcendentals=False):
        if gan_type not in ("vanilla", "lsgan", "wgan", "wgan_softplus",
                            "hinge"):
            raise NotImplementedError(
                f"GAN type {gan_type} is not implemented.")
        self.gan_type = gan_type
        self.real_label_val = real_label_val
        self.fake_label_val = fake_label_val
        self.loss_weight = loss_weight
        # bf16 exp/log on the EUP (v6e/v7x relief); default off to keep
        # bit-level parity with the f32 reference.
        self.bf16_transcendentals = bf16_transcendentals

    def __call__(self, x, target_is_real, is_disc=False):
        trans_dtype = (jnp.bfloat16 if self.bf16_transcendentals
                       else jnp.float32)
        elem_fn = _make_elem_fn(self.gan_type, bool(target_is_real),
                                bool(is_disc), self.real_label_val,
                                self.fake_label_val, trans_dtype)
        tpe = 2 if self.gan_type in ("vanilla", "wgan_softplus") else 0
        total, n = _pallas_sum(elem_fn, jnp.asarray(x),
                               transcendentals_per_elem=tpe)
        loss = total / jnp.float32(n)
        if not is_disc:
            loss = loss * jnp.float32(self.loss_weight)
        return loss


# ---------------------------------------------------------------------------
# Pure-JAX reference (mirrors the PyTorch module) + smoke test
# ---------------------------------------------------------------------------
def _ref_gan_loss(x, gan_type, target_is_real, is_disc,
                  real_label_val=1.0, fake_label_val=0.0, loss_weight=1.0):
    x = x.astype(jnp.float32)
    if gan_type == "vanilla":
        t = real_label_val if target_is_real else fake_label_val
        loss = jnp.mean(jnp.maximum(x, 0.0) - x * t
                        + jnp.log1p(jnp.exp(-jnp.abs(x))))
    elif gan_type == "lsgan":
        t = real_label_val if target_is_real else fake_label_val
        loss = jnp.mean((x - t) ** 2)
    elif gan_type == "wgan":
        loss = -jnp.mean(x) if target_is_real else jnp.mean(x)
    elif gan_type == "wgan_softplus":
        z = -x if target_is_real else x
        loss = jnp.mean(jax.nn.softplus(z))
    elif gan_type == "hinge":
        if is_disc:
            xx = -x if target_is_real else x
            loss = jnp.mean(jax.nn.relu(1.0 + xx))
        else:
            loss = -jnp.mean(x)
    return loss if is_disc else loss * loss_weight


if __name__ == "__main__":
    key = jax.random.PRNGKey(0)
    N, C, H, W = 2, 4, 16, 16
    x = jax.random.normal(key, (N, C, H, W), dtype=jnp.float32)

    cases = [
        ("vanilla", True, False), ("vanilla", False, True),
        ("lsgan", True, False), ("lsgan", False, True),
        ("wgan", True, False), ("wgan", False, True),
        ("wgan_softplus", True, False), ("wgan_softplus", False, True),
        ("hinge", True, True), ("hinge", False, True), ("hinge", True, False),
    ]
    for gan_type, target_is_real, is_disc in cases:
        crit = GANLossPallas(gan_type, loss_weight=2.0)
        got = crit(x, target_is_real, is_disc=is_disc)
        jax.block_until_ready(got)
        want = _ref_gan_loss(x, gan_type, target_is_real, is_disc,
                             loss_weight=2.0)
        assert jnp.allclose(got, want, rtol=1e-5, atol=1e-5), (
            gan_type, target_is_real, is_disc, float(got), float(want))

    # bf16 input with a ragged element count (exercises native-dtype
    # streaming, the aligned-prefix kernel path and the in-wrapper tail).
    xb = jax.random.normal(jax.random.PRNGKey(0), (2, 4, 16, 17),
                           dtype=jnp.bfloat16)
    got_b = GANLossPallas("lsgan")(xb, True, is_disc=False)
    jax.block_until_ready(got_b)
    want_b = _ref_gan_loss(xb, "lsgan", True, False)
    assert jnp.allclose(got_b, want_b, rtol=1e-2, atol=1e-2), (
        float(got_b), float(want_b))

    # Tiny tensor: entire reduction goes through the plain-JAX tail path.
    xt = jax.random.normal(jax.random.PRNGKey(0), (3, 5, 7, 3),
                           dtype=jnp.float32)
    got_t = GANLossPallas("hinge")(xt, True, is_disc=True)
    jax.block_until_ready(got_t)
    want_t = _ref_gan_loss(xt, "hinge", True, True)
    assert jnp.allclose(got_t, want_t, rtol=1e-5, atol=1e-5), (
        float(got_t), float(want_t))

    # bf16-EUP softplus tail (v6e/v7x relief) — loose tolerance vs f32 ref.
    got_e = GANLossPallas("vanilla", bf16_transcendentals=True)(
        x, True, is_disc=False)
    jax.block_until_ready(got_e)
    want_e = _ref_gan_loss(x, "vanilla", True, False)
    assert jnp.allclose(got_e, want_e, rtol=3e-2, atol=3e-2), (
        float(got_e), float(want_e))

    print("KERNEL_OK")
</pallas_src>

<mosaic_0001>
module attributes {stable_mosaic.version = 11 : i64} {
  func.func @_gan_reduce_kernel(%arg0: i32, %arg1: i32, %arg2: memref<16x128xf32, #tpu.memory_space<vmem>>, %arg3: memref<1x8x128xf32, #tpu.memory_space<vmem>>) attributes {dimension_semantics = [#tpu.dimension_semantics<arbitrary>, #tpu.dimension_semantics<arbitrary>], iteration_bounds = array<i64: 1, 1>, scalar_prefetch = 0 : i64, scratch_operands = 0 : i64, tpu.core_type = #tpu.core_type<tc>, window_params = [{transform_indices = @transform_0, window_bounds = array<i64: 16, 128>}, {transform_indices = @transform_1, window_bounds = array<i64: 1, 8, 128>}]} {
    %c0_i32 = arith.constant 0 : i32
    %0 = arith.cmpi eq, %arg1, %c0_i32 : i32
    %1 = arith.extui %0 : i1 to i32
    %c0_i32_0 = arith.constant 0 : i32
    %2 = arith.cmpi ne, %1, %c0_i32_0 : i32
    scf.if %2 {
      %cst_12 = arith.constant 0.000000e+00 : f32
      %23 = vector.broadcast %cst_12 : f32 to vector<1x8x128xf32>
      %c0_13 = arith.constant 0 : index
      %c0_14 = arith.constant 0 : index
      %c0_15 = arith.constant 0 : index
      %24 = vector.load %arg3[%c0_13, %c0_14, %c0_15] : memref<1x8x128xf32, #tpu.memory_space<vmem>>, vector<1x8x128xf32>
      tpu.vector_store %arg3[%c0_13, %c0_14, %c0_15], %23 {strides = array<i32>} : memref<1x8x128xf32, #tpu.memory_space<vmem>>, vector<1x8x128xf32>,
    } else {
    }
    %c0 = arith.constant 0 : index
    %c0_1 = arith.constant 0 : index
    %3 = vector.load %arg2[%c0, %c0_1] : memref<16x128xf32, #tpu.memory_space<vmem>>, vector<16x128xf32>
    %cst = arith.constant 0.000000e+00 : f32
    %4 = vector.broadcast %cst : f32 to vector<16x128xf32>
    %5 = arith.maximumf %3, %4 : vector<16x128xf32>
    %cst_2 = arith.constant 1.000000e+00 : f32
    %6 = vector.broadcast %cst_2 : f32 to vector<16x128xf32>
    %7 = arith.mulf %3, %6 : vector<16x128xf32>
    %8 = arith.subf %5, %7 : vector<16x128xf32>
    %9 = math.absf %3 : vector<16x128xf32>
    %cst_3 = arith.constant 0.000000e+00 : f32
    %10 = vector.broadcast %cst_3 : f32 to vector<16x128xf32>
    %11 = arith.subf %10, %9 : vector<16x128xf32>
    %12 = math.exp %11 : vector<16x128xf32>
    %cst_4 = arith.constant 1.000000e+00 : f32
    %13 = vector.broadcast %cst_4 : f32 to vector<16x128xf32>
    %14 = arith.addf %13, %12 : vector<16x128xf32>
    %15 = math.log %14 : vector<16x128xf32>
    %16 = arith.addf %8, %15 : vector<16x128xf32>
    %c0_5 = arith.constant 0 : index
    %c0_6 = arith.constant 0 : index
    %c0_7 = arith.constant 0 : index
    %17 = vector.load %arg3[%c0_5, %c0_6, %c0_7] : memref<1x8x128xf32, #tpu.memory_space<vmem>>, vector<1x8x128xf32>
    %18 = vector.shape_cast %16 : vector<16x128xf32> to vector<2x8x128xf32>
    %cst_8 = arith.constant dense<0.000000e+00> : vector<8x128xf32>
    %19 = vector.multi_reduction <add>, %18, %cst_8 [0] : vector<2x8x128xf32> to vector<8x128xf32>
    %20 = vector.shape_cast %19 : vector<8x128xf32> to vector<1x8x128xf32>
    %21 = arith.addf %17, %20 : vector<1x8x128xf32>
    %c0_9 = arith.constant 0 : index
    %c0_10 = arith.constant 0 : index
    %c0_11 = arith.constant 0 : index
    %22 = vector.load %arg3[%c0_9, %c0_10, %c0_11] : memref<1x8x128xf32, #tpu.memory_space<vmem>>, vector<1x8x128xf32>
    tpu.vector_store %arg3[%c0_9, %c0_10, %c0_11], %21 {strides = array<i32>} : memref<1x8x128xf32, #tpu.memory_space<vmem>>, vector<1x8x128xf32>,
    return
  }
  func.func @transform_0(%arg0: i32, %arg1: i32) -> (i32, i32) {
    %c1_i32 = arith.constant 1 : i32
    %0 = arith.muli %arg0, %c1_i32 : i32
    %1 = arith.addi %0, %arg1 : i32
    %c0_i32 = arith.constant 0 : i32
    %c0_i32_0 = arith.constant 0 : i32
    return %1, %c0_i32 : i32, i32
  }
  func.func @transform_1(%arg0: i32, %arg1: i32) -> (i32, i32, i32) {
    %c0_i32 = arith.constant 0 : i32
    %c0_i32_0 = arith.constant 0 : i32
    %c0_i32_1 = arith.constant 0 : i32
    return %arg0, %c0_i32, %c0_i32_0 : i32, i32, i32
  }
}

</mosaic_0001>

<bundles_post_ra>
// kernel: tpu_custom_call.1
= control target key start
LH: loop header
LB: loop body
LE: loop exit
PB: predicated region body
PF: predicated region fallthrough
CT: control target
= control target key end

     0   :  { %6 = vsyncpa [#allocation3], 0  ;;  %s174_s0 = inlined_call_operand.hbm [shape: f32[16,128], index: 0, kind: input, shape index: {}]   ;;  %s175_s1 = inlined_call_operand.hbm [shape: f32[1,8,128], index: 1, kind: output, shape index: {}]  }
   0x1   :  { %7 = vsyncpa [#allocation4], 0  ;;  %s136_s6 = smov [#allocation2]   ;;  %s88_s10 = scalar_lea.hbm %s174_s0, 256 }
   0x2   :  { %s17_s7 = sshll.u32 %s136_s6, 4  ;;  %p89_p0 = scmp.ne.s32.totalorder %s174_s0, %s88_s10  ;;  %s18_s7 = int_to_ptr.vmem [resolvable:$true] %s17_s7 }
   0x3   :  { %p92_p1 = scmp.lt.u32.totalorder %s88_s10, %s174_s0 }
   0x5   :  { %p94_p2 = pnand %p92_p1, %p89_p0 }
   0x7   :  { %97 = shalt.err (!%p94_p2)
}
   0x8   :  { %s98_s15 = scalar_lea.vmem %s18_s7, 256  ;;  %p103_p4 = scmp.lt.s32.totalorder %s18_s7, %s18_s7 }
   0x9   :  { %p99_p3 = scmp.ne.s32.totalorder %s18_s7, %s98_s15  ;;  %p104_p5 = scmp.lt.s32.totalorder %s98_s15, %s98_s15 }
   0xb   :  { %p105_p6 = por %p104_p5, %p103_p4 }
   0xd   :  { %p106_p7 = pnand %p105_p6, %p99_p3 }
   0xf   :  { %109 = shalt.err (!%p106_p7)
}
  0x10   :  { %s137_s16 = smov 128   ;;  %s138_s17 = smov 8  }
  0x11   :  { %23 = dma.hbm_to_vmem [thread:$0]  %s174_s0, 256, %s18_s7, [#allocation3], %s137_s16, %s137_s16, %s138_s17  }
  0x12   :  { %132 = dma.done.wait [#allocation3], 256  }
  0x13   :  { %133 = vsyncadd [#allocation3], 4294967040  ;;  %v34_v0 = vld [vmem:[#allocation2] sm:$0xff]  ;;  %v35_v1 = vld [vmem:[#allocation2 + $0x8] sm:$0xff]  ;;  %s139_s0 = smov [#allocation5]  }
  0x14   :  { %v40_v2 = vand.u32 2147483647, %v34_v0  ;;  %v41_v3 = vand.u32 2147483647, %v35_v1  ;;  %v36_v12 = vmax.f32 %v34_v0, 0.0  ;;  %v37_v13 = vmax.f32 %v35_v1, 0.0 }
  0x15   :  { %s66_s20 = sshll.u32 %s139_s0, 4  ;;  %s67_s20 = int_to_ptr.vmem [resolvable:$true] %s66_s20 }
  0x16   :  { %v42_v4 = vsub.f32 0.0, %v40_v2  ;;  %v43_v5 = vsub.f32 0.0, %v41_v3  ;;  %v38_v14 = vsub.f32 %v36_v12, %v34_v0  ;;  %v39_v16 = vsub.f32 %v37_v13, %v35_v1  ;;  %s110_s21 = scalar_lea.vmem %s67_s20, 128  ;;  %p115_p9 = scmp.lt.s32.totalorder %s67_s20, %s67_s20 }
  0x17   :  { %p111_p8 = scmp.ne.s32.totalorder %s67_s20, %s110_s21  ;;  %p116_p10 = scmp.lt.s32.totalorder %s110_s21, %s110_s21 }
  0x18   :  { %v44_v6 = vmul.f32 1.442695, %v42_v4  ;;  %v46_v7 = vmul.f32 1.442695, %v43_v5 }
  0x19   :  { %p117_p11 = por %p116_p10, %p115_p9 }
  0x1a   :  { %80 = vpow2.f32 %v44_v6 }
  0x1b   :  { %82 = vpow2.f32 %v46_v7  ;;  %p118_p12 = pnand %p117_p11, %p111_p8 }
  0x24   :  { %v81_v8 = vpop.eup %80 }
  0x25   :  { %v83_v9 = vpop.eup %82  ;;  %v48_v10 = vadd.f32 1.0, %v81_v8 }
  0x26   :  { %v49_v11 = vadd.f32 1.0, %v83_v9 }
  0x27   :  { %84 = vlog2.f32 %v48_v10 }
  0x28   :  { %86 = vlog2.f32 %v49_v11 }
  0x31   :  { %v85_v15 = vpop.eup %84 }
  0x32   :  { %v87_v17 = vpop.eup %86  ;;  %v51_v18 = vmul.f32 0.6931472, %v85_v15 }
  0x33   :  { %v53_v19 = vmul.f32 0.6931472, %v87_v17 }
  0x34   :  { %v54_v20 = vadd.f32 %v51_v18, %v38_v14 }
  0x35   :  { %v55_v21 = vadd.f32 %v53_v19, %v39_v16 }
  0x37   :  { %v57_v22 = vadd.f32 %v55_v21, %v54_v20 }
  0x39   :  { %59 = vst [vmem:[#allocation5] sm:$0xff] %v57_v22 }
  0x3a   :  { %121 = shalt.err (!%p118_p12)
}
  0x3b   :  { %s122_s24 = scalar_lea.hbm %s175_s1, 128 }
  0x3c   :  { %p123_p13 = scmp.ne.s32.totalorder %s175_s1, %s122_s24  ;;  %p126_p0 = scmp.lt.u32.totalorder %s122_s24, %s175_s1 }
  0x3e   :  { %p128_p1 = pnand %p126_p0, %p123_p13 }
  0x40   :  { %131 = shalt.err (!%p128_p1)
}
  0x41   :  { %69 = dma.vmem_to_hbm [thread:$0]  %s67_s20, 128, %s175_s1, [#allocation4]  }
  0x42   :  { %134 = dma.done.wait [#allocation4], 128  }
  0x43   :  { %135 = vsyncadd [#allocation4], 4294967168 }
  0x44   :  { %73 = vsyncpa [#allocation3], 1 }
  0x45   :  { %74 = vsyncpa [#allocation4], 1 }

</bundles_post_ra>
